<compile_context>
chip_gen: v7x
topology: tpu7x:2x2x1
jax: 0.10.0
libtpu: 0.0.40
codegen_flags: <defaults>
</compile_context>

<pallas_src>
import functools
import math

import jax
import jax.numpy as jnp
from jax.experimental import pallas as pl
from jax.experimental.pallas import tpu as pltpu


def _round_up(x, m):
    return ((x + m - 1) // m) * m


def _actor_kernel(deterministic, with_logprob, a_pad, *refs):
    """One batch tile: MLP -> logits -> (log_softmax, probs, action)."""
    if deterministic:
        (obs_ref, w1_ref, b1_ref, w2_ref, b2_ref, w3_ref, b3_ref,
         out_ref) = refs
        gum_ref = None
    else:
        (gum_ref, obs_ref, w1_ref, b1_ref, w2_ref, b2_ref, w3_ref, b3_ref,
         out_ref) = refs

    x = obs_ref[...]                                   # (TB, F) bf16

    # MLP hot path on the MXU: bf16 operands, f32 accumulation.
    h1 = jnp.maximum(
        jnp.dot(x, w1_ref[...], preferred_element_type=jnp.float32)
        + b1_ref[...], 0.0)
    h2 = jnp.maximum(
        jnp.dot(h1.astype(jnp.bfloat16), w2_ref[...],
                preferred_element_type=jnp.float32)
        + b2_ref[...], 0.0)
    # w3/b3 are padded to A_pad lanes; padded bias is -1e30 so those columns
    # can never win the argmax and contribute exp(...) == 0 to the softmax.
    logits = (jnp.dot(h2.astype(jnp.bfloat16), w3_ref[...],
                      preferred_element_type=jnp.float32)
              + b3_ref[...])                           # (TB, A_pad) f32

    if deterministic:
        # torch.argmax(logits, dim=-1)
        score = logits
    else:
        # Categorical(logits=logits).sample() via the Gumbel-max trick.
        score = logits + gum_ref[...]

    # argmax along the last axis (first index on ties, matching torch).
    col = jax.lax.broadcasted_iota(jnp.int32, score.shape, 1)
    best = jnp.max(score, axis=-1, keepdims=True)
    big = jnp.iinfo(jnp.int32).max
    idx = jnp.min(jnp.where(score >= best, col, big), axis=-1, keepdims=True)
    idx_f = idx.astype(jnp.float32)                    # small int, exact in f32

    if with_logprob:
        # log_softmax along the action axis (F.log_softmax(logits, dim=-1)).
        m = jnp.max(logits, axis=-1, keepdims=True)
        z = logits - m
        lse = jnp.log(jnp.sum(jnp.exp(z), axis=-1, keepdims=True))
        logp = z - lse
        # Fold the float-encoded action into the last padding lane of the
        # logp half so the whole writeback is one lane-dense slab.
        logp_out = jnp.where(col == a_pad - 1, idx_f, logp)
        out_ref[:, :a_pad] = logp_out
        out_ref[:, a_pad:] = jnp.exp(logp)
    else:
        out_ref[...] = jnp.broadcast_to(idx_f, out_ref.shape)


def categorical_mlp_actor_forward(obs, params, *, seed=0,
                                  deterministic=False, with_logprob=True):
    """Forward pass of CategoricalMLPActor with feng='mlp'.

    params = (w1, b1, w2, b2, w3, b3) with w_j of shape (fan_in, fan_out).
    NOTE: callers must vary `seed` between stochastic calls, otherwise the
    Gumbel noise (and hence the sampled actions) repeats.
    """
    w1, b1, w2, b2, w3, b3 = params
    batch = obs.shape[0]
    act_dim = w3.shape[1]
    h1_dim = w1.shape[1]
    h2_dim = w2.shape[1]

    # Lane padding: at least one spare lane to carry the action index.
    a_pad = _round_up(act_dim + 1, 128)

    # Flatten + cast observations to bf16 (halves the dominant input DMA).
    x = obs.reshape(batch, -1).astype(jnp.bfloat16)
    feat_dim = x.shape[1]

    # Batch tiling: TB rows per grid step, weights stay VMEM-resident.
    b_pad = _round_up(batch, 8)
    tb = min(256, b_pad)
    b_pad = _round_up(b_pad, tb)
    if b_pad != batch:
        x = jnp.pad(x, ((0, b_pad - batch), (0, 0)))
    grid = (b_pad // tb,)

    # Pad the output layer so logits are lane-dense; padded bias = -1e30 so
    # the extra columns are inert for both softmax and argmax.
    w1b = w1.astype(jnp.bfloat16)
    w2b = w2.astype(jnp.bfloat16)
    w3b = jnp.pad(w3.astype(jnp.bfloat16), ((0, 0), (0, a_pad - act_dim)))
    b1f = b1.reshape(1, -1).astype(jnp.float32)
    b2f = b2.reshape(1, -1).astype(jnp.float32)
    b3f = jnp.pad(b3.reshape(1, -1).astype(jnp.float32),
                  ((0, 0), (0, a_pad - act_dim)), constant_values=-1e30)

    def batch_spec(width):
        return pl.BlockSpec((tb, width), lambda i: (i, 0))

    def resident_spec(shape):
        return pl.BlockSpec(shape, lambda i: (0, 0))

    in_specs = []
    args = []
    if not deterministic:
        gum = jax.random.gumbel(jax.random.PRNGKey(seed), (b_pad, a_pad),
                                dtype=jnp.float32)
        in_specs.append(batch_spec(a_pad))
        args.append(gum)
    in_specs += [
        batch_spec(feat_dim),
        resident_spec((feat_dim, h1_dim)), resident_spec((1, h1_dim)),
        resident_spec((h1_dim, h2_dim)), resident_spec((1, h2_dim)),
        resident_spec((h2_dim, a_pad)), resident_spec((1, a_pad)),
    ]
    args += [x, w1b, b1f, w2b, b2f, w3b, b3f]

    out_w = 2 * a_pad if with_logprob else 128
    kernel = functools.partial(_actor_kernel, bool(deterministic),
                               bool(with_logprob), a_pad)

    out = pl.pallas_call(
        kernel,
        out_shape=jax.ShapeDtypeStruct((b_pad, out_w), jnp.float32),
        grid=grid,
        in_specs=in_specs,
        out_specs=batch_spec(out_w),
        compiler_params=pltpu.CompilerParams(
            dimension_semantics=("parallel",)),
    )(*args)

    if with_logprob:
        pi_action = out[:batch, a_pad - 1].astype(jnp.int32)
        logp_pi = out[:batch, :act_dim]
        probs = out[:batch, a_pad:a_pad + act_dim]
        return pi_action, logp_pi, probs
    pi_action = out[:batch, 0].astype(jnp.int32)
    return pi_action, None, None


def init_params(key, feat_dim, hidden_sizes, act_dim):
    """Deterministic init mimicking nn.Linear's U(-1/sqrt(fan_in), 1/sqrt(fan_in))."""
    sizes = [feat_dim] + list(hidden_sizes) + [act_dim]
    params = []
    for j in range(len(sizes) - 1):
        fan_in, fan_out = sizes[j], sizes[j + 1]
        key, kw, kb = jax.random.split(key, 3)
        bound = 1.0 / (fan_in ** 0.5)
        w = jax.random.uniform(kw, (fan_in, fan_out), jnp.float32, -bound, bound)
        b = jax.random.uniform(kb, (fan_out,), jnp.float32, -bound, bound)
        params += [w, b]
    return tuple(params)


if __name__ == "__main__":
    # obs_dim = (4, 16, 16) -> feat_dim = 1024 (feng='mlp'),
    # hidden_sizes = (32, 32), act_dim = 6, batch = 2
    key = jax.random.PRNGKey(0)
    k_obs, k_par = jax.random.split(key)

    batch, obs_dim, hidden_sizes, act_dim = 2, (4, 16, 16), (32, 32), 6
    obs = jax.random.normal(k_obs, (batch, *obs_dim), jnp.float32)
    feat_dim = obs_dim[0] * obs_dim[1] * obs_dim[2]
    params = init_params(k_par, feat_dim, hidden_sizes, act_dim)

    # Stochastic path: Categorical sample via Gumbel-max.
    pi_action, logp_pi, probs = categorical_mlp_actor_forward(
        obs, params, seed=0, deterministic=False, with_logprob=True)
    jax.block_until_ready((pi_action, logp_pi, probs))

    # Deterministic path: argmax over logits.
    pi_det, logp_det, probs_det = categorical_mlp_actor_forward(
        obs, params, seed=0, deterministic=True, with_logprob=True)
    jax.block_until_ready((pi_det, logp_det, probs_det))

    # Acting hot path: no log-probs computed or returned.
    pi_nolog, l_none, p_none = categorical_mlp_actor_forward(
        obs, params, seed=0, deterministic=True, with_logprob=False)
    jax.block_until_ready(pi_nolog)

    # Plain-JAX reference using the same bf16-operand / f32-accumulate matmuls.
    def ref_logits(o, p):
        w1, b1, w2, b2, w3, b3 = p
        xr = o.reshape(o.shape[0], -1).astype(jnp.bfloat16)
        h1 = jnp.maximum(
            jnp.dot(xr, w1.astype(jnp.bfloat16),
                    preferred_element_type=jnp.float32) + b1, 0.0)
        h2 = jnp.maximum(
            jnp.dot(h1.astype(jnp.bfloat16), w2.astype(jnp.bfloat16),
                    preferred_element_type=jnp.float32) + b2, 0.0)
        return jnp.dot(h2.astype(jnp.bfloat16), w3.astype(jnp.bfloat16),
                       preferred_element_type=jnp.float32) + b3

    lg = ref_logits(obs, params)
    ref_logp = jax.nn.log_softmax(lg, axis=-1)

    assert logp_pi.shape == (batch, act_dim) and probs.shape == (batch, act_dim)
    assert jnp.allclose(logp_pi, ref_logp, atol=1e-3, rtol=1e-3), "log_softmax mismatch"
    assert jnp.allclose(logp_det, ref_logp, atol=1e-3, rtol=1e-3), "log_softmax mismatch (det)"
    assert jnp.allclose(probs.sum(-1), 1.0, atol=1e-4), "probs do not sum to 1"
    # Deterministic action must be the argmax of the kernel's own log-probs.
    assert jnp.array_equal(pi_det, jnp.argmax(logp_det, axis=-1)), "argmax mismatch"
    assert jnp.array_equal(pi_nolog, pi_det), "with_logprob=False action mismatch"
    assert bool(jnp.all((pi_action >= 0) & (pi_action < act_dim))), "sample out of range"
    assert l_none is None and p_none is None

    print("KERNEL_OK")
</pallas_src>

<mosaic_0001>
module attributes {stable_mosaic.version = 11 : i64} {
  func.func @_actor_kernel(%arg0: i32, %arg1: memref<8x128xf32, #tpu.memory_space<vmem>>, %arg2: memref<8x1024xbf16, #tpu.memory_space<vmem>>, %arg3: memref<1024x32xbf16, #tpu.memory_space<vmem>>, %arg4: memref<1x32xf32, #tpu.memory_space<vmem>>, %arg5: memref<32x32xbf16, #tpu.memory_space<vmem>>, %arg6: memref<1x32xf32, #tpu.memory_space<vmem>>, %arg7: memref<32x128xbf16, #tpu.memory_space<vmem>>, %arg8: memref<1x128xf32, #tpu.memory_space<vmem>>, %arg9: memref<8x256xf32, #tpu.memory_space<vmem>>) attributes {dimension_semantics = [#tpu.dimension_semantics<parallel>], iteration_bounds = array<i64: 1>, scalar_prefetch = 0 : i64, scratch_operands = 0 : i64, tpu.core_type = #tpu.core_type<tc>, window_params = [{transform_indices = @transform_0, window_bounds = array<i64: 8, 128>}, {transform_indices = @transform_1, window_bounds = array<i64: 8, 1024>}, {pipeline_mode = #tpu.pipeline_mode<synchronous>, transform_indices = @transform_2, window_bounds = array<i64: 1024, 32>}, {pipeline_mode = #tpu.pipeline_mode<synchronous>, transform_indices = @transform_3, window_bounds = array<i64: 1, 32>}, {pipeline_mode = #tpu.pipeline_mode<synchronous>, transform_indices = @transform_4, window_bounds = array<i64: 32, 32>}, {pipeline_mode = #tpu.pipeline_mode<synchronous>, transform_indices = @transform_5, window_bounds = array<i64: 1, 32>}, {pipeline_mode = #tpu.pipeline_mode<synchronous>, transform_indices = @transform_6, window_bounds = array<i64: 32, 128>}, {pipeline_mode = #tpu.pipeline_mode<synchronous>, transform_indices = @transform_7, window_bounds = array<i64: 1, 128>}, {transform_indices = @transform_8, window_bounds = array<i64: 8, 256>}]} {
    %c0 = arith.constant 0 : index
    %c0_0 = arith.constant 0 : index
    %0 = vector.load %arg2[%c0, %c0_0] : memref<8x1024xbf16, #tpu.memory_space<vmem>>, vector<8x1024xbf16>
    %c0_1 = arith.constant 0 : index
    %c0_2 = arith.constant 0 : index
    %1 = vector.load %arg3[%c0_1, %c0_2] : memref<1024x32xbf16, #tpu.memory_space<vmem>>, vector<1024x32xbf16>
    %cst = arith.constant dense<0.000000e+00> : vector<8x32xf32>
    %2 = tpu.matmul %0, %1, %cst {dimension_numbers = #tpu.dot_dimension_numbers<[1], [0], [0], [1], [0, 0, 1, 1], [], []>} : vector<8x1024xbf16>, vector<1024x32xbf16>, vector<8x32xf32> -> vector<8x32xf32>
    %c0_3 = arith.constant 0 : index
    %c0_4 = arith.constant 0 : index
    %3 = vector.load %arg4[%c0_3, %c0_4] : memref<1x32xf32, #tpu.memory_space<vmem>>, vector<1x32xf32>
    %4 = vector.broadcast %3 : vector<1x32xf32> to vector<8x32xf32>
    %5 = arith.addf %2, %4 : vector<8x32xf32>
    %cst_5 = arith.constant 0.000000e+00 : f32
    %6 = vector.broadcast %cst_5 : f32 to vector<8x32xf32>
    %7 = arith.maximumf %5, %6 : vector<8x32xf32>
    %8 = arith.truncf %7 : vector<8x32xf32> to vector<8x32xbf16>
    %c0_6 = arith.constant 0 : index
    %c0_7 = arith.constant 0 : index
    %9 = vector.load %arg5[%c0_6, %c0_7] : memref<32x32xbf16, #tpu.memory_space<vmem>>, vector<32x32xbf16>
    %cst_8 = arith.constant dense<0.000000e+00> : vector<8x32xf32>
    %10 = tpu.matmul %8, %9, %cst_8 {dimension_numbers = #tpu.dot_dimension_numbers<[1], [0], [0], [1], [0, 0, 1, 1], [], []>} : vector<8x32xbf16>, vector<32x32xbf16>, vector<8x32xf32> -> vector<8x32xf32>
    %c0_9 = arith.constant 0 : index
    %c0_10 = arith.constant 0 : index
    %11 = vector.load %arg6[%c0_9, %c0_10] : memref<1x32xf32, #tpu.memory_space<vmem>>, vector<1x32xf32>
    %12 = vector.broadcast %11 : vector<1x32xf32> to vector<8x32xf32>
    %13 = arith.addf %10, %12 : vector<8x32xf32>
    %cst_11 = arith.constant 0.000000e+00 : f32
    %14 = vector.broadcast %cst_11 : f32 to vector<8x32xf32>
    %15 = arith.maximumf %13, %14 : vector<8x32xf32>
    %16 = arith.truncf %15 : vector<8x32xf32> to vector<8x32xbf16>
    %c0_12 = arith.constant 0 : index
    %c0_13 = arith.constant 0 : index
    %17 = vector.load %arg7[%c0_12, %c0_13] : memref<32x128xbf16, #tpu.memory_space<vmem>>, vector<32x128xbf16>
    %cst_14 = arith.constant dense<0.000000e+00> : vector<8x128xf32>
    %18 = tpu.matmul %16, %17, %cst_14 {dimension_numbers = #tpu.dot_dimension_numbers<[1], [0], [0], [1], [0, 0, 1, 1], [], []>} : vector<8x32xbf16>, vector<32x128xbf16>, vector<8x128xf32> -> vector<8x128xf32>
    %c0_15 = arith.constant 0 : index
    %c0_16 = arith.constant 0 : index
    %19 = vector.load %arg8[%c0_15, %c0_16] : memref<1x128xf32, #tpu.memory_space<vmem>>, vector<1x128xf32>
    %20 = vector.broadcast %19 : vector<1x128xf32> to vector<8x128xf32>
    %21 = arith.addf %18, %20 : vector<8x128xf32>
    %c0_17 = arith.constant 0 : index
    %c0_18 = arith.constant 0 : index
    %22 = vector.load %arg1[%c0_17, %c0_18] : memref<8x128xf32, #tpu.memory_space<vmem>>, vector<8x128xf32>
    %23 = arith.addf %21, %22 : vector<8x128xf32>
    %24 = tpu.iota {dimensions = array<i32: 1>} : vector<8x128xi32>
    %cst_19 = arith.constant dense<0xFF800000> : vector<8xf32>
    %25 = vector.multi_reduction <maximumf>, %23, %cst_19 [1] : vector<8x128xf32> to vector<8xf32>
    %26 = vector.shape_cast %25 : vector<8xf32> to vector<8x1xf32>
    %27 = vector.broadcast %26 : vector<8x1xf32> to vector<8x128xf32>
    %28 = arith.cmpf oge, %23, %27 : vector<8x128xf32>
    %c2147483647_i32 = arith.constant 2147483647 : i32
    %29 = vector.broadcast %c2147483647_i32 : i32 to vector<8x128xi32>
    %30 = arith.select %28, %24, %29 : vector<8x128xi1>, vector<8x128xi32>
    %cst_20 = arith.constant dense<2147483647> : vector<8xi32>
    %31 = vector.multi_reduction <minsi>, %30, %cst_20 [1] : vector<8x128xi32> to vector<8xi32>
    %32 = vector.shape_cast %31 : vector<8xi32> to vector<8x1xi32>
    %33 = arith.sitofp %32 : vector<8x1xi32> to vector<8x1xf32>
    %cst_21 = arith.constant dense<0xFF800000> : vector<8xf32>
    %34 = vector.multi_reduction <maximumf>, %21, %cst_21 [1] : vector<8x128xf32> to vector<8xf32>
    %35 = vector.shape_cast %34 : vector<8xf32> to vector<8x1xf32>
    %36 = vector.broadcast %35 : vector<8x1xf32> to vector<8x128xf32>
    %37 = arith.subf %21, %36 : vector<8x128xf32>
    %38 = math.exp %37 : vector<8x128xf32>
    %cst_22 = arith.constant dense<0.000000e+00> : vector<8xf32>
    %39 = vector.multi_reduction <add>, %38, %cst_22 [1] : vector<8x128xf32> to vector<8xf32>
    %40 = vector.shape_cast %39 : vector<8xf32> to vector<8x1xf32>
    %41 = math.log %40 : vector<8x1xf32>
    %42 = vector.broadcast %41 : vector<8x1xf32> to vector<8x128xf32>
    %43 = arith.subf %37, %42 : vector<8x128xf32>
    %c127_i32 = arith.constant 127 : i32
    %44 = vector.broadcast %c127_i32 : i32 to vector<8x128xi32>
    %45 = arith.cmpi eq, %24, %44 : vector<8x128xi32>
    %46 = vector.shape_cast %33 : vector<8x1xf32> to vector<8x1xf32>
    %47 = vector.broadcast %46 : vector<8x1xf32> to vector<8x128xf32>
    %48 = arith.select %45, %47, %43 : vector<8x128xi1>, vector<8x128xf32>
    %c0_23 = arith.constant 0 : index
    %c0_24 = arith.constant 0 : index
    %49 = vector.load %arg9[%c0_23, %c0_24] : memref<8x256xf32, #tpu.memory_space<vmem>>, vector<8x128xf32>
    tpu.vector_store %arg9[%c0_23, %c0_24], %48 {strides = array<i32>} : memref<8x256xf32, #tpu.memory_space<vmem>>, vector<8x128xf32>,
    %50 = math.exp %43 : vector<8x128xf32>
    %c0_25 = arith.constant 0 : index
    %c128 = arith.constant 128 : index
    %51 = vector.load %arg9[%c0_25, %c128] : memref<8x256xf32, #tpu.memory_space<vmem>>, vector<8x128xf32>
    tpu.vector_store %arg9[%c0_25, %c128], %50 {strides = array<i32>} : memref<8x256xf32, #tpu.memory_space<vmem>>, vector<8x128xf32>,
    return
  }
  func.func @transform_0(%arg0: i32) -> (i32, i32) {
    %c0_i32 = arith.constant 0 : i32
    %c0_i32_0 = arith.constant 0 : i32
    return %arg0, %c0_i32 : i32, i32
  }
  func.func @transform_1(%arg0: i32) -> (i32, i32) {
    %c0_i32 = arith.constant 0 : i32
    %c0_i32_0 = arith.constant 0 : i32
    return %arg0, %c0_i32 : i32, i32
  }
  func.func @transform_2(%arg0: i32) -> (i32, i32) {
    %c0_i32 = arith.constant 0 : i32
    %c0_i32_0 = arith.constant 0 : i32
    %c0_i32_1 = arith.constant 0 : i32
    return %c0_i32, %c0_i32_0 : i32, i32
  }
  func.func @transform_3(%arg0: i32) -> (i32, i32) {
    %c0_i32 = arith.constant 0 : i32
    %c0_i32_0 = arith.constant 0 : i32
    %c0_i32_1 = arith.constant 0 : i32
    return %c0_i32, %c0_i32_0 : i32, i32
  }
  func.func @transform_4(%arg0: i32) -> (i32, i32) {
    %c0_i32 = arith.constant 0 : i32
    %c0_i32_0 = arith.constant 0 : i32
    %c0_i32_1 = arith.constant 0 : i32
    return %c0_i32, %c0_i32_0 : i32, i32
  }
  func.func @transform_5(%arg0: i32) -> (i32, i32) {
    %c0_i32 = arith.constant 0 : i32
    %c0_i32_0 = arith.constant 0 : i32
    %c0_i32_1 = arith.constant 0 : i32
    return %c0_i32, %c0_i32_0 : i32, i32
  }
  func.func @transform_6(%arg0: i32) -> (i32, i32) {
    %c0_i32 = arith.constant 0 : i32
    %c0_i32_0 = arith.constant 0 : i32
    %c0_i32_1 = arith.constant 0 : i32
    return %c0_i32, %c0_i32_0 : i32, i32
  }
  func.func @transform_7(%arg0: i32) -> (i32, i32) {
    %c0_i32 = arith.constant 0 : i32
    %c0_i32_0 = arith.constant 0 : i32
    %c0_i32_1 = arith.constant 0 : i32
    return %c0_i32, %c0_i32_0 : i32, i32
  }
  func.func @transform_8(%arg0: i32) -> (i32, i32) {
    %c0_i32 = arith.constant 0 : i32
    %c0_i32_0 = arith.constant 0 : i32
    return %arg0, %c0_i32 : i32, i32
  }
}

</mosaic_0001>

<bundles_post_ra>
// kernel: tpu_custom_call.1
= control target key start
LH: loop header
LB: loop body
LE: loop exit
PB: predicated region body
PF: predicated region fallthrough
CT: control target
= control target key end

     0   :  { %s1520_s0 = inlined_call_operand.vmem [shape: f32[8,128], index: 0, kind: input, shape index: {}]   ;;  %s1521_s1 = inlined_call_operand.vmem [shape: bf16[8,1024], index: 1, kind: input, shape index: {}]   ;;  %s1522_s2 = inlined_call_operand.vmem [shape: bf16[1024,32], index: 2, kind: input, shape index: {}]   ;;  %s1523_s3 = inlined_call_operand.vmem [shape: f32[1,32], index: 3, kind: input, shape index: {}]   ;;  %s1524_s4 = inlined_call_operand.vmem [shape: bf16[32,32], index: 4, kind: input, shape index: {}]   ;;  %s1525_s5 = inlined_call_operand.vmem [shape: f32[1,32], index: 5, kind: input, shape index: {}]   ;;  %s1526_s6 = inlined_call_operand.vmem [shape: bf16[32,128], index: 6, kind: input, shape index: {}]   ;;  %s1527_s7 = inlined_call_operand.vmem [shape: f32[1,128], index: 7, kind: input, shape index: {}]   ;;  %s1528_s8 = inlined_call_operand.hbm [shape: f32[8,256], index: 8, kind: output, shape index: {}]  }
   0x1   :  { %v1126_v0 = vld [vmem:[%s1522_s2 + $0x40] sm:$0xff]   ;;  %v1130_v4 = vld [vmem:[%s1522_s2 + $0x48] sm:$0xff]   ;;  %v1134_v8 = vld [vmem:[%s1522_s2 + $0x50] sm:$0xff]  }
   0x2   :  { %v1127_v1 = vld [vmem:[%s1522_s2 + $0xc0] sm:$0xff]   ;;  %1013 = vmatprep.subr.bf16.mxu0 %v1126_v0  ;;  %v1131_v5 = vld [vmem:[%s1522_s2 + $0xc8] sm:$0xff]   ;;  %v1135_v9 = vld [vmem:[%s1522_s2 + $0xd0] sm:$0xff]  }
   0x3   :  { %v1128_v2 = vld [vmem:[%s1522_s2] sm:$0xff]   ;;  %1035 = vmatprep.subr.bf16.mxu1 %v1127_v1  ;;  %v1132_v6 = vld [vmem:[%s1522_s2 + $0x8] sm:$0xff]   ;;  %v1136_v10 = vld [vmem:[%s1522_s2 + $0x10] sm:$0xff]  }
   0x4   :  { %v1129_v3 = vld [vmem:[%s1522_s2 + $0x80] sm:$0xff]   ;;  %1014 = vmatpush3.bf16.msra.mxu0 %v1128_v2  ;;  %v1133_v7 = vld [vmem:[%s1522_s2 + $0x88] sm:$0xff]   ;;  %v1137_v11 = vld [vmem:[%s1522_s2 + $0x90] sm:$0xff]  }
   0x5   :  { %1036 = vmatpush3.bf16.msra.mxu1 %v1129_v3  ;;  %1015 = vmatprep.subr.bf16.mxu0 %v1130_v4  ;;  %v1138_v12 = vld [vmem:[%s1522_s2 + $0x58] sm:$0xff]   ;;  %v1142_v16 = vld [vmem:[%s1522_s2 + $0x60] sm:$0xff]   ;;  %v1146_v20 = vld [vmem:[%s1522_s2 + $0x68] sm:$0xff]  }
   0x6   :  { %1037 = vmatprep.subr.bf16.mxu1 %v1131_v5  ;;  %v1139_v13 = vld [vmem:[%s1522_s2 + $0xd8] sm:$0xff]   ;;  %v1143_v17 = vld [vmem:[%s1522_s2 + $0xe0] sm:$0xff]   ;;  %v1147_v21 = vld [vmem:[%s1522_s2 + $0xe8] sm:$0xff]  }
   0x7   :  { %v1140_v14 = vld [vmem:[%s1522_s2 + $0x18] sm:$0xff]   ;;  %v1144_v18 = vld [vmem:[%s1522_s2 + $0x20] sm:$0xff]   ;;  %v1148_v22 = vld [vmem:[%s1522_s2 + $0x28] sm:$0xff]  }
   0x8   :  { %1016 = vmatpush3.bf16.msra.mxu0 %v1132_v6  ;;  %v1141_v15 = vld [vmem:[%s1522_s2 + $0x98] sm:$0xff]   ;;  %v1145_v19 = vld [vmem:[%s1522_s2 + $0xa0] sm:$0xff]   ;;  %v1149_v23 = vld [vmem:[%s1522_s2 + $0xa8] sm:$0xff]  }
   0x9   :  { %1038 = vmatpush3.bf16.msra.mxu1 %v1133_v7  ;;  %1017 = vmatprep.subr.bf16.mxu0 %v1134_v8  ;;  %v1150_v24 = vld [vmem:[%s1522_s2 + $0x70] sm:$0xff]   ;;  %v1154_v28 = vld [vmem:[%s1522_s2 + $0x78] sm:$0xff]   ;;  %v31_v32 = vld [vmem:[%s1521_s1] sm:$0xff] }
   0xa   :  { %1039 = vmatprep.subr.bf16.mxu1 %v1135_v9  ;;  %v1151_v25 = vld [vmem:[%s1522_s2 + $0xf0] sm:$0xff]   ;;  %v1155_v29 = vld [vmem:[%s1522_s2 + $0xf8] sm:$0xff]   ;;  %v32_v33 = vld [vmem:[%s1521_s1 + $0x8] sm:$0xff]  ;;  %v933_v34 = vcombine.low %v31_v32, %v31_v32  ;;  %v934_v35 = vcombine.high %v31_v32, %v31_v32 }
   0xb   :  { %v1152_v26 = vld [vmem:[%s1522_s2 + $0x30] sm:$0xff]   ;;  %v1156_v30 = vld [vmem:[%s1522_s2 + $0x38] sm:$0xff]   ;;  %v935_v36 = vcombine.low %v32_v33, %v32_v33  ;;  %v936_v37 = vcombine.high %v32_v33, %v32_v33  ;;  %v1162_v38 = vld [vmem:[%s1522_s2 + $0x140] sm:$0xff]  }
   0xc   :  { %1018 = vmatpush3.bf16.msra.mxu0 %v1136_v10  ;;  %v1153_v27 = vld [vmem:[%s1522_s2 + $0xb0] sm:$0xff]   ;;  %v1157_v31 = vld [vmem:[%s1522_s2 + $0xb8] sm:$0xff]   ;;  %v1163_v39 = vld [vmem:[%s1522_s2 + $0x1c0] sm:$0xff]   ;;  %614 = vmatprep.mubr.bf16.mxu0 %v934_v35 }
   0xd   :  { %1040 = vmatpush3.bf16.msra.mxu1 %v1137_v11  ;;  %1019 = vmatprep.subr.bf16.mxu0 %v1138_v12  ;;  %v1164_v40 = vld [vmem:[%s1522_s2 + $0x100] sm:$0xff]   ;;  %v1166_v42 = vld [vmem:[%s1522_s2 + $0x148] sm:$0xff]   ;;  %v1170_v46 = vld [vmem:[%s1522_s2 + $0x150] sm:$0xff]  }
   0xe   :  { %1041 = vmatprep.subr.bf16.mxu1 %v1139_v13  ;;  %654 = vmatprep.mubr.bf16.mxu1 %v936_v37  ;;  %v1165_v41 = vld [vmem:[%s1522_s2 + $0x180] sm:$0xff]   ;;  %v1167_v43 = vld [vmem:[%s1522_s2 + $0x1c8] sm:$0xff]   ;;  %v1171_v47 = vld [vmem:[%s1522_s2 + $0x1d0] sm:$0xff]  }
   0xf   :  { %v1168_v44 = vld [vmem:[%s1522_s2 + $0x108] sm:$0xff]   ;;  %v1172_v48 = vld [vmem:[%s1522_s2 + $0x110] sm:$0xff]   ;;  %v1174_v50 = vld [vmem:[%s1522_s2 + $0x158] sm:$0xff]  }
  0x10   :  { %1020 = vmatpush3.bf16.msra.mxu0 %v1140_v14  ;;  %v1169_v45 = vld [vmem:[%s1522_s2 + $0x188] sm:$0xff]   ;;  %v1173_v49 = vld [vmem:[%s1522_s2 + $0x190] sm:$0xff]   ;;  %v1175_v51 = vld [vmem:[%s1522_s2 + $0x1d8] sm:$0xff]  }
  0x11   :  { %1042 = vmatpush3.bf16.msra.mxu1 %v1141_v15  ;;  %1021 = vmatprep.subr.bf16.mxu0 %v1142_v16  ;;  %v1176_v52 = vld [vmem:[%s1522_s2 + $0x118] sm:$0xff]   ;;  %v1178_v54 = vld [vmem:[%s1522_s2 + $0x160] sm:$0xff]   ;;  %v1182_v58 = vld [vmem:[%s1522_s2 + $0x168] sm:$0xff]  }
  0x12   :  { %1043 = vmatprep.subr.bf16.mxu1 %v1143_v17  ;;  %v1177_v53 = vld [vmem:[%s1522_s2 + $0x198] sm:$0xff]   ;;  %v1179_v55 = vld [vmem:[%s1522_s2 + $0x1e0] sm:$0xff]   ;;  %v1183_v59 = vld [vmem:[%s1522_s2 + $0x1e8] sm:$0xff]  }
  0x13   :  { %v1180_v56 = vld [vmem:[%s1522_s2 + $0x120] sm:$0xff]   ;;  %v1184_v60 = vld [vmem:[%s1522_s2 + $0x128] sm:$0xff]   ;;  %v1186_v62 = vld [vmem:[%s1522_s2 + $0x170] sm:$0xff]  }
  0x14   :  { %1022 = vmatpush3.bf16.msra.mxu0 %v1144_v18  ;;  %v1181_v57 = vld [vmem:[%s1522_s2 + $0x1a0] sm:$0xff]   ;;  %v1185_v61 = vld [vmem:[%s1522_s2 + $0x1a8] sm:$0xff]   ;;  %v1187_v63 = vld [vmem:[%s1522_s2 + $0x1f0] sm:$0xff]  }
  0x15   :  { %1044 = vmatpush3.bf16.msra.mxu1 %v1145_v19  ;;  %1023 = vmatprep.subr.bf16.mxu0 %v1146_v20  ;;  %v1188_v0 = vld [vmem:[%s1522_s2 + $0x130] sm:$0xff]   ;;  %v1190_v2 = vld [vmem:[%s1522_s2 + $0x178] sm:$0xff]  }
  0x16   :  { %1045 = vmatprep.subr.bf16.mxu1 %v1147_v21  ;;  %v1189_v1 = vld [vmem:[%s1522_s2 + $0x1b0] sm:$0xff]   ;;  %v1191_v3 = vld [vmem:[%s1522_s2 + $0x1f8] sm:$0xff]  }
  0x17   :  { %v1192_v4 = vld [vmem:[%s1522_s2 + $0x138] sm:$0xff]   ;;  %v33_v6 = vld [vmem:[%s1521_s1 + $0x10] sm:$0xff] }
  0x18   :  { %1024 = vmatpush3.bf16.msra.mxu0 %v1148_v22  ;;  %v1193_v5 = vld [vmem:[%s1522_s2 + $0x1b8] sm:$0xff]   ;;  %v937_v7 = vcombine.low %v33_v6, %v33_v6  ;;  %v938_v8 = vcombine.high %v33_v6, %v33_v6 }
  0x19   :  { %1046 = vmatpush3.bf16.msra.mxu1 %v1149_v23  ;;  %1025 = vmatprep.subr.bf16.mxu0 %v1150_v24  ;;  %v34_v9 = vld [vmem:[%s1521_s1 + $0x18] sm:$0xff] }
  0x1a   :  { %1047 = vmatprep.subr.bf16.mxu1 %v1151_v25  ;;  %v939_v10 = vcombine.low %v34_v9, %v34_v9  ;;  %v940_v11 = vcombine.high %v34_v9, %v34_v9 }
  0x1c   :  { %1026 = vmatpush3.bf16.msra.mxu0 %v1152_v26 }
  0x1d   :  { %1048 = vmatpush3.bf16.msra.mxu1 %v1153_v27  ;;  %1027 = vmatprep.subr.bf16.mxu0 %v1154_v28 }
  0x1e   :  { %1049 = vmatprep.subr.bf16.mxu1 %v1155_v29 }
  0x20   :  { %1028 = vmatpush3.bf16.msra.mxu0 %v1156_v30 }
  0x21   :  { %1050 = vmatpush3.bf16.msra.mxu1 %v1157_v31  ;;  %1057 = vmatprep.subr.bf16.mxu0 %v1162_v38 }
  0x22   :  { %1079 = vmatprep.subr.bf16.mxu1 %v1163_v39 }
  0x23   :  { %615 = vmatmul.mubr.bf16.vlgmr.msra.gmra.mrb[0].mxu0 %v933_v34 }
  0x24   :  { %655 = vmatmul.mubr.bf16.vlgmr.msra.gmra.mrb[0].mxu1 %v935_v36  ;;  %1058 = vmatpush3.bf16.msra.mxu0 %v1164_v40 }
  0x25   :  { %1080 = vmatpush3.bf16.msra.mxu1 %v1165_v41  ;;  %1059 = vmatprep.subr.bf16.mxu0 %v1166_v42 }
  0x26   :  { %1081 = vmatprep.subr.bf16.mxu1 %v1167_v43  ;;  %694 = vmatprep.mubr.bf16.mxu0 %v938_v8 }
  0x27   :  { %734 = vmatprep.mubr.bf16.mxu1 %v940_v11 }
  0x28   :  { %1060 = vmatpush3.bf16.msra.mxu0 %v1168_v44 }
  0x29   :  { %1082 = vmatpush3.bf16.msra.mxu1 %v1169_v45  ;;  %1061 = vmatprep.subr.bf16.mxu0 %v1170_v46 }
  0x2a   :  { %1083 = vmatprep.subr.bf16.mxu1 %v1171_v47 }
  0x2c   :  { %1062 = vmatpush3.bf16.msra.mxu0 %v1172_v48 }
  0x2d   :  { %1084 = vmatpush3.bf16.msra.mxu1 %v1173_v49  ;;  %1063 = vmatprep.subr.bf16.mxu0 %v1174_v50 }
  0x2e   :  { %1085 = vmatprep.subr.bf16.mxu1 %v1175_v51 }
  0x30   :  { %1064 = vmatpush3.bf16.msra.mxu0 %v1176_v52 }
  0x31   :  { %1086 = vmatpush3.bf16.msra.mxu1 %v1177_v53  ;;  %1065 = vmatprep.subr.bf16.mxu0 %v1178_v54 }
  0x32   :  { %1087 = vmatprep.subr.bf16.mxu1 %v1179_v55 }
  0x34   :  { %1066 = vmatpush3.bf16.msra.mxu0 %v1180_v56 }
  0x35   :  { %1088 = vmatpush3.bf16.msra.mxu1 %v1181_v57  ;;  %1067 = vmatprep.subr.bf16.mxu0 %v1182_v58 }
  0x36   :  { %1089 = vmatprep.subr.bf16.mxu1 %v1183_v59 }
  0x38   :  { %1068 = vmatpush3.bf16.msra.mxu0 %v1184_v60 }
  0x39   :  { %1090 = vmatpush3.bf16.msra.mxu1 %v1185_v61  ;;  %1069 = vmatprep.subr.bf16.mxu0 %v1186_v62 }
  0x3a   :  { %1091 = vmatprep.subr.bf16.mxu1 %v1187_v63 }
  0x3c   :  { %1070 = vmatpush3.bf16.msra.mxu0 %v1188_v0 }
  0x3d   :  { %1092 = vmatpush3.bf16.msra.mxu1 %v1189_v1  ;;  %1071 = vmatprep.subr.bf16.mxu0 %v1190_v2 }
  0x3e   :  { %1093 = vmatprep.subr.bf16.mxu1 %v1191_v3 }
  0x40   :  { %1072 = vmatpush3.bf16.msra.mxu0 %v1192_v4 }
  0x41   :  { %1094 = vmatpush3.bf16.msra.mxu1 %v1193_v5 }
  0x42   :  { %13 = vsyncpa [#allocation3], 0  ;;  %v1198_v12 = vld [vmem:[%s1524_s4] sm:$0xff]   ;;  %v1232_v13 = vmov 0.0   ;;  %v1199_v14 = vld [vmem:[%s1524_s4 + $0x8] sm:$0xff]   ;;  %vm1233_vm0 = vmmov 0   ;;  %v881_v60 = vlaneseq }
  0x43   :  { %695 = vmatmul.mubr.bf16.vlgmr.msra.gmra.mrb[4].mxu0 %v937_v7  ;;  %1107 = vmatprep.subr.bf16.mxu0 %v1232_v13  ;;  %v1200_v15 = vld [vmem:[%s1526_s6] sm:$0xff]   ;;  %vm767_vm1 = vcmask 261120   ;;  %v1201_v43 = vld [vmem:[%s1526_s6 + $0x8] sm:$0xff]  }
  0x44   :  { %735 = vmatmul.mubr.bf16.vlgmr.msra.gmra.mrb[4].mxu1 %v939_v10  ;;  %1115 = vmatprep.subr.bf16.mxu1 %v1232_v13  ;;  %v932_v18 = vld [vmem:[%s1523_s3] ss:$0 sm:$0xff]  ;;  %v882_v61 = vand.u32 127, %v881_v60 }
  0x45   :  { %1108 = vmatpush3.bf16.msra.mxu0 %v1198_v12  ;;  %1111 = vmatprep.mubr.msk.bf16.mxu0 %vm1233_vm0, %v1232_v13  ;;  %v1005_v44 = vld [vmem:[%s1525_s5] ss:$0 sm:$0xff] }
  0x46   :  { %1109 = vmatprep.subr.bf16.mxu0 %v1232_v13  ;;  %1119 = vmatprep.mubr.msk.bf16.mxu1 %vm1233_vm0, %v1232_v13  ;;  %v1009_v52 = vld [vmem:[%s1527_s7] ss:$0 sm:$0xff]  ;;  %vm912_vm4 = vcmp.eq.s32.totalorder %v882_v61, 127 }
  0x47   :  { %1116 = vmatpush3.bf16.msra.mxu1 %v1200_v15  ;;  %v879_v54 = vld [vmem:[%s1520_s0] sm:$0xff]  ;;  %s1234_s0 = smov [#allocation2]  }
  0x48   :  { %1117 = vmatprep.subr.bf16.mxu1 %v1232_v13  ;;  %s924_s5 = sshll.u32 %s1234_s0, 4  ;;  %s925_s5 = int_to_ptr.vmem [resolvable:$true] %s924_s5 }
  0x49   :  { %1110 = vmatpush3.bf16.msra.mxu0 %v1199_v14  ;;  %s1208_s7 = scalar_lea.vmem %s925_s5, 256  ;;  %p1213_p1 = scmp.lt.s32.totalorder %s925_s5, %s925_s5 }
  0x4a   :  { %p1209_p0 = scmp.ne.s32.totalorder %s925_s5, %s1208_s7  ;;  %p1214_p2 = scmp.lt.s32.totalorder %s1208_s7, %s1208_s7 }
  0x4b   :  { %1118 = vmatpush3.bf16.msra.mxu1 %v1201_v43 }
  0x4c   :  { %p1215_p3 = por %p1214_p2, %p1213_p1 }
  0x4e   :  { %p1216_p4 = pnand %p1215_p3, %p1209_p0 }
  0xf6   :  { %v1029_v16 = vpop.f32.mrb[0].mxu0 }
  0xf7   :  { %v1051_v17 = vpop.f32.mrb[0].mxu1  ;;  %v1030_v19 = vpop.f32.mrb[1].mxu0 }
  0xf8   :  { %v1052_v20 = vpop.f32.mrb[1].mxu1  ;;  %v1031_v21 = vadd.f32 %v1030_v19, %v1029_v16  ;;  %v1032_v23 = vpop.f32.mrb[2].mxu0 }
  0xf9   :  { %v1053_v22 = vadd.f32 %v1052_v20, %v1051_v17  ;;  %v1054_v24 = vpop.f32.mrb[2].mxu1  ;;  %v1033_v25 = vpop.f32.mrb[3].mxu0 }
  0xfa   :  { %v1055_v26 = vpop.f32.mrb[3].mxu1  ;;  %v617_v27 = vadd.f32 %v1031_v21, %v932_v18 }
  0xfc   :  { %v657_v28 = vadd.f32 %v1053_v22, %v617_v27 }
 0x116   :  { %v1073_v29 = vpop.f32.mrb[4].mxu0 }
 0x117   :  { %v1095_v30 = vpop.f32.mrb[4].mxu1  ;;  %v1074_v31 = vpop.f32.mrb[5].mxu0 }
 0x118   :  { %v1096_v32 = vpop.f32.mrb[5].mxu1  ;;  %v1075_v33 = vadd.f32 %v1074_v31, %v1073_v29  ;;  %v1076_v35 = vpop.f32.mrb[6].mxu0 }
 0x119   :  { %v1097_v34 = vadd.f32 %v1096_v32, %v1095_v30  ;;  %v1098_v36 = vpop.f32.mrb[6].mxu1  ;;  %v1077_v37 = vpop.f32.mrb[7].mxu0 }
 0x11a   :  { %v1099_v38 = vpop.f32.mrb[7].mxu1  ;;  %v697_v39 = vadd.f32 %v1075_v33, %v657_v28 }
 0x11c   :  { %v737_v40 = vadd.f32 %v1097_v34, %v697_v39 }
 0x11e   :  { %v742_v41 = vmax.f32 %v737_v40, 0.0 }
 0x120   :  { %v743_v42 = vpack.c.bf16 %v742_v41, %v742_v41 }
 0x122   :  { %1112 = vmatmul.mubr.msk.bf16.vlgmr.msra.gmra.mrb[8].mxu0 %vm767_vm1, %v743_v42 }
 0x1f5   :  { %v805_v45 = vpop.f32.mrb[8].mxu0 }
 0x1f6   :  { %v806_v46 = vadd.f32 %v1005_v44, %v805_v45  ;;  %v1113_v47 = vpop.f32.mrb[9].mxu0 }
 0x1f7   :  { %v808_v48 = vpop.f32.mrb[10].mxu0 }
 0x1f8   :  { %v811_v49 = vmax.f32 %v806_v46, 0.0  ;;  %v1114_v50 = vpop.f32.mrb[11].mxu0 }
 0x1fa   :  { %v812_v51 = vpack.c.bf16 %v811_v49, %v811_v49 }
 0x1fc   :  { %1120 = vmatmul.mubr.msk.bf16.vlgmr.msra.gmra.mrb[8].mxu1 %vm767_vm1, %v812_v51 }
 0x2cf   :  { %v873_v53 = vpop.f32.mrb[8].mxu1 }
 0x2d0   :  { %v874_v55 = vadd.f32 %v1009_v52, %v873_v53  ;;  %v1121_v56 = vpop.f32.mrb[9].mxu1 }
 0x2d1   :  { %v876_v57 = vpop.f32.mrb[10].mxu1 }
 0x2d2   :  { %v1122_v58 = vpop.f32.mrb[11].mxu1  ;;  %v880_v59 = vadd.f32 %v879_v54, %v874_v55 }
 0x2d4   :  { %883 = vmax.xlane.f32.xlu0 %v880_v59 }
 0x2d8   :  { %902 = vmax.xlane.f32.xlu0 %v874_v55 }
 0x361   :  { %v884_v62 = vpop.xlane.xlu0 %883 }
 0x362   :  { %vm885_vm2 = vcmp.ge.f32.partialorder %v880_v59, %v884_v62 }
 0x363   :  { %v886_v63 = vsel %vm885_vm2, %v882_v61, 2147483647 }
 0x364   :  { %v888_v0 = vshra.s32 %v886_v63, 16  ;;  %v887_v6 = vand.u32 65535, %v886_v63 }
 0x365   :  { %v903_v1 = vpop.xlane.xlu0 %902 }
 0x366   :  { %v904_v2 = vsub.f32 %v874_v55, %v903_v1  ;;  %v890_v3 = vcvt.s32.f32 %v888_v0  ;;  %v889_v8 = vcvt.s32.f32 %v887_v6 }
 0x368   :  { %v905_v4 = vmul.f32 1.442695, %v904_v2  ;;  %891 = vmin.xlane.f32.xlu1 %v890_v3 }
 0x36a   :  { %1202 = vpow2.f32 %v905_v4 }
 0x374   :  { %v1203_v5 = vpop.eup %1202 }
 0x375   :  { %907 = vadd.xlane.f32.xlu1 %v1203_v5 }
 0x3f5   :  { %v892_v7 = vpop.xlane.xlu1 %891 }
 0x3f6   :  { %vm893_vm3 = vcmp.eq.f32.partialorder %v890_v3, %v892_v7  ;;  %v898_v16 = vcvt.f32.s32 %v892_v7 }
 0x3f7   :  { %v894_v9 = vsel %vm893_vm3, %v889_v8, inf }
 0x3f8   :  { %895 = vmin.xlane.f32.xlu0 %v894_v9  ;;  %v899_v18 = vshll.u32 %v898_v16, 16 }
 0x402   :  { %v908_v10 = vpop.xlane.xlu1 %907 }
 0x403   :  { %1204 = vlog2.f32 %v908_v10 }
 0x40d   :  { %v1205_v11 = vpop.eup %1204 }
 0x40e   :  { %v910_v12 = vmul.f32 0.6931472, %v1205_v11 }
 0x410   :  { %v911_v13 = vsub.f32 %v904_v2, %v910_v12 }
 0x412   :  { %v915_v14 = vmul.f32 1.442695, %v911_v13 }
 0x414   :  { %1206 = vpow2.f32 %v915_v14 }
 0x41e   :  { %v1207_v15 = vpop.eup %1206 }
 0x41f   :  { %917 = vst [vmem:[#allocation2 + $0x8] sm:$0xff] %v1207_v15 }
 0x485   :  { %v896_v17 = vpop.xlane.xlu0 %895 }
 0x486   :  { %v897_v19 = vcvt.f32.s32 %v896_v17 }
 0x488   :  { %v900_v20 = vadd.s32 %v899_v18, %v897_v19 }
 0x48a   :  { %v901_v21 = vcvt.s32.f32 %v900_v20 }
 0x48c   :  { %v913_v22 = vsel %vm912_vm4, %v901_v21, %v911_v13 }
 0x48d   :  { %914 = vst [vmem:[#allocation2] sm:$0xff] %v913_v22 }
 0x48e   :  { %1219 = shalt.err (!%p1216_p4)
}
 0x48f   :  { %s1220_s22 = scalar_lea.hbm %s1528_s8, 256 }
 0x490   :  { %p1221_p5 = scmp.ne.s32.totalorder %s1528_s8, %s1220_s22  ;;  %p1224_p6 = scmp.lt.u32.totalorder %s1220_s22, %s1528_s8 }
 0x492   :  { %p1226_p7 = pnand %p1224_p6, %p1221_p5 }
 0x494   :  { %1229 = shalt.err (!%p1226_p7)
}
 0x495   :  { %927 = dma.vmem_to_hbm [thread:$0]  %s925_s5, 256, %s1528_s8, [#allocation3]  }
 0x496   :  { %1230 = dma.done.wait [#allocation3], 256  }
 0x497   :  { %1231 = vsyncadd [#allocation3], 4294967040 }
 0x498   :  { %931 = vsyncpa [#allocation3], 1 }

</bundles_post_ra>
